<compile_context>
chip_gen: v6e
topology: v6e:2x2x1
jax: 0.10.0
libtpu: 0.0.40
codegen_flags: <defaults>
</compile_context>

<pallas_src>
import jax
import jax.numpy as jnp
from jax.experimental import pallas as pl
from jax.experimental.pallas import tpu as pltpu


def _round_down(x, m):
    return (x // m) * m


def _vmem_capacity_bytes():
    """Physical VMEM per TensorCore (conservative fallback = v7x's 64 MiB)."""
    try:
        info = pltpu.get_tpu_info()
        cap = getattr(info, "vmem_capacity_bytes", None)
        if cap:
            return int(cap)
    except Exception:
        pass
    return 64 << 20


def decoder_kernel(x_ref, w1_ref, b1_ref, w2_ref, b2_ref, o_ref):
    # h = tanh(x @ W1 + b1), recomputed per grid point. Cheap (L, H << N) and
    # removes any cross-grid-axis state, so both grid axes can run "parallel"
    # and W2 stays the only streamed array.
    h = jnp.dot(x_ref[...], w1_ref[...], preferred_element_type=jnp.float32)
    h = jnp.tanh(h + b1_ref[...].astype(jnp.float32))
    # Second linear on the streamed W2 tile: [tb, H] @ [H, tn] + [1, tn],
    # f32 accumulate on the MXU.
    y = jnp.dot(h.astype(w2_ref.dtype), w2_ref[...],
                preferred_element_type=jnp.float32)
    o_ref[...] = (y + b2_ref[...].astype(jnp.float32)).astype(o_ref.dtype)


def decoder_forward(x, w1, b1, w2, b2, *, tb=None, tn=None):
    """x: [B, L]; w1: [L, H]; b1: [1, H]; w2: [H, N]; b2: [1, N] -> [B, N]."""
    B, L = x.shape
    Lw, H = w1.shape
    Hw, N = w2.shape
    assert L == Lw and H == Hw, "shape mismatch between x / w1 / w2"
    b1 = b1.reshape(1, H)
    b2 = b2.reshape(1, N)

    x_isz = jnp.dtype(x.dtype).itemsize
    w_isz = jnp.dtype(w1.dtype).itemsize
    o_isz = x_isz

    # ---- VMEM budget (leave headroom for Mosaic internal scratch) --------
    phys = _vmem_capacity_bytes()
    vmem_budget = min((phys * 3) // 4, 56 << 20)
    tile_budget = (vmem_budget * 2) // 3          # raw tile bytes must fit here

    # ---- tile selection ---------------------------------------------------
    # Batch tile: full batch if it fits the cap, else a multiple of 8 (ragged
    # tail handled by Pallas masked stores). tb no longer affects W2 traffic.
    if tb is None:
        tb = B if B <= 512 else 512
    if tb < B:
        tb = max(8, _round_down(tb, 8))
    else:
        tb = B
    # N tile: lane-dense multiple of 128 (or the full N when N <= 128).
    if tn is None:
        tn = N if N <= 128 else min(2048, max(128, _round_down(N, 128)))
    if tn < N:
        tn = max(128, _round_down(tn, 128))
    else:
        tn = N

    def _footprint(tb_, tn_):
        return (2 * tb_ * L * x_isz        # x tile (double-buffered)
                + 2 * L * H * w_isz        # W1 (constant index; DMA'd once)
                + 2 * H * w_isz            # b1
                + 2 * H * tn_ * w_isz      # W2 stream (double-buffered)
                + 2 * tn_ * w_isz          # b2
                + 2 * tb_ * tn_ * o_isz)   # out tile (double-buffered)

    # Shrink the streamed N tile first, then the batch tile, until we fit.
    while tn > 128 and _footprint(tb, tn) > tile_budget:
        tn = max(128, _round_down(tn - 1, 128))
    while tb > 8 and _footprint(tb, tn) > tile_budget:
        tb = max(8, _round_down(tb - 1, 8))

    fp = _footprint(tb, tn)
    vmem_limit = int(min(vmem_budget, max(16 << 20, fp + fp // 2 + (2 << 20))))

    # Grid: N tiles OUTER, batch tiles INNER -> W2/b2 block index is constant
    # across the inner sweep, so each W2 tile is DMA'd from HBM exactly once.
    grid = (pl.cdiv(N, tn), pl.cdiv(B, tb))
    n_tiles = grid[0]

    cost = pl.CostEstimate(
        flops=2 * B * L * H * n_tiles + 2 * B * H * N,
        transcendentals=B * H * n_tiles,
        bytes_accessed=(x_isz * B * L * n_tiles          # x re-read per N tile
                        + w_isz * (L * H + H + H * N + N)  # weights read once
                        + o_isz * B * N),                  # output written once
    )

    return pl.pallas_call(
        decoder_kernel,
        out_shape=jax.ShapeDtypeStruct((B, N), x.dtype),
        grid_spec=pltpu.PrefetchScalarGridSpec(
            num_scalar_prefetch=0,
            grid=grid,
            in_specs=[
                pl.BlockSpec((tb, L), lambda n, b: (b, 0)),   # x batch tile
                pl.BlockSpec((L, H), lambda n, b: (0, 0)),    # W1 (resident)
                pl.BlockSpec((1, H), lambda n, b: (0, 0)),    # b1
                pl.BlockSpec((H, tn), lambda n, b: (0, n)),   # W2 (streamed, read once)
                pl.BlockSpec((1, tn), lambda n, b: (0, n)),   # b2
            ],
            out_specs=pl.BlockSpec((tb, tn), lambda n, b: (b, n)),
        ),
        compiler_params=pltpu.CompilerParams(
            dimension_semantics=("parallel", "parallel"),
            vmem_limit_bytes=vmem_limit,
        ),
        cost_estimate=cost,
    )(x, w1, b1, w2, b2)


def init_decoder_params(key, latent_size, hidden_size, num_items,
                        dtype=jnp.float32):
    """Mirror the PyTorch module's init:
       - weights: xavier_normal_  (std = sqrt(2 / (fan_in + fan_out)))
       - biases:  nn.Linear default uniform(-1/sqrt(fan_in), 1/sqrt(fan_in))
       Weights are returned already transposed to [in, out]."""
    k1, k2, k3, k4 = jax.random.split(key, 4)
    std1 = (2.0 / (latent_size + hidden_size)) ** 0.5
    std2 = (2.0 / (hidden_size + num_items)) ** 0.5
    w1 = (std1 * jax.random.normal(k1, (latent_size, hidden_size))).astype(dtype)
    w2 = (std2 * jax.random.normal(k2, (hidden_size, num_items))).astype(dtype)
    bnd1 = 1.0 / (latent_size ** 0.5)
    bnd2 = 1.0 / (hidden_size ** 0.5)
    b1 = jax.random.uniform(k3, (1, hidden_size), minval=-bnd1, maxval=bnd1).astype(dtype)
    b2 = jax.random.uniform(k4, (1, num_items), minval=-bnd2, maxval=bnd2).astype(dtype)
    return w1, b1, w2, b2


def _reference(x, w1, b1, w2, b2):
    f32 = jnp.float32
    h = jnp.tanh(x.astype(f32) @ w1.astype(f32) + b1.astype(f32))
    return h @ w2.astype(f32) + b2.astype(f32)


if __name__ == "__main__":
    key = jax.random.PRNGKey(0)

    # --- Test 1: small, module-consistent shapes (single grid step) -------
    B, L, H, N = 8, 32, 64, 128
    kx, kp, key = jax.random.split(key, 3)
    x = jax.random.normal(kx, (B, L), dtype=jnp.float32)
    w1, b1, w2, b2 = init_decoder_params(kp, L, H, N)
    out = jax.block_until_ready(decoder_forward(x, w1, b1, w2, b2))
    ref = _reference(x, w1, b1, w2, b2)
    assert out.shape == (B, N)
    assert jnp.allclose(out, ref, atol=2e-2, rtol=2e-2), "test1 mismatch"

    # --- Test 2: non-divisible B and N, multi-step grid (ragged tails) ----
    B, L, H, N = 300, 32, 64, 300
    kx, kp, key = jax.random.split(key, 3)
    x = jax.random.normal(kx, (B, L), dtype=jnp.float32)
    w1, b1, w2, b2 = init_decoder_params(kp, L, H, N)
    out = jax.block_until_ready(
        decoder_forward(x, w1, b1, w2, b2, tb=256, tn=128))  # grid = (3, 2)
    ref = _reference(x, w1, b1, w2, b2)
    assert out.shape == (B, N)
    assert jnp.allclose(out, ref, atol=2e-2, rtol=2e-2), "test2 mismatch"
    # also exercise the default (untiled-arg) path with ragged tails
    out_d = jax.block_until_ready(decoder_forward(x, w1, b1, w2, b2))
    assert jnp.allclose(out_d, ref, atol=2e-2, rtol=2e-2), "test2 default mismatch"

    # --- Test 3: bf16 weights (streamed-weight regime), f32 accumulate ----
    B, L, H, N = 64, 32, 64, 256
    kx, kp, key = jax.random.split(key, 3)
    x = jax.random.normal(kx, (B, L), dtype=jnp.float32)
    w1, b1, w2, b2 = init_decoder_params(kp, L, H, N, dtype=jnp.bfloat16)
    out = jax.block_until_ready(decoder_forward(x, w1, b1, w2, b2))
    ref = _reference(x, w1, b1, w2, b2)
    assert out.shape == (B, N)
    assert bool(jnp.all(jnp.isfinite(out)))
    assert jnp.allclose(out, ref, atol=1e-1, rtol=1e-1), "test3 mismatch"

    print("KERNEL_OK")
</pallas_src>

<mosaic_0001>
module attributes {stable_mosaic.version = 11 : i64} {
  func.func @decoder_kernel(%arg0: i32, %arg1: i32, %arg2: memref<8x32xf32, #tpu.memory_space<vmem>>, %arg3: memref<32x64xf32, #tpu.memory_space<vmem>>, %arg4: memref<1x64xf32, #tpu.memory_space<vmem>>, %arg5: memref<64x128xf32, #tpu.memory_space<vmem>>, %arg6: memref<1x128xf32, #tpu.memory_space<vmem>>, %arg7: memref<8x128xf32, #tpu.memory_space<vmem>>) attributes {dimension_semantics = [#tpu.dimension_semantics<parallel>, #tpu.dimension_semantics<parallel>], iteration_bounds = array<i64: 1, 1>, scalar_prefetch = 0 : i64, scratch_operands = 0 : i64, tpu.core_type = #tpu.core_type<tc>, window_params = [{transform_indices = @transform_0, window_bounds = array<i64: 8, 32>}, {pipeline_mode = #tpu.pipeline_mode<synchronous>, transform_indices = @transform_1, window_bounds = array<i64: 32, 64>}, {pipeline_mode = #tpu.pipeline_mode<synchronous>, transform_indices = @transform_2, window_bounds = array<i64: 1, 64>}, {transform_indices = @transform_3, window_bounds = array<i64: 64, 128>}, {transform_indices = @transform_4, window_bounds = array<i64: 1, 128>}, {transform_indices = @transform_5, window_bounds = array<i64: 8, 128>}]} {
    %c0 = arith.constant 0 : index
    %c0_0 = arith.constant 0 : index
    %0 = vector.load %arg2[%c0, %c0_0] : memref<8x32xf32, #tpu.memory_space<vmem>>, vector<8x32xf32>
    %c0_1 = arith.constant 0 : index
    %c0_2 = arith.constant 0 : index
    %1 = vector.load %arg3[%c0_1, %c0_2] : memref<32x64xf32, #tpu.memory_space<vmem>>, vector<32x64xf32>
    %cst = arith.constant dense<0.000000e+00> : vector<8x64xf32>
    %2 = tpu.matmul %0, %1, %cst {dimension_numbers = #tpu.dot_dimension_numbers<[1], [0], [0], [1], [0, 0, 1, 1], [], []>} : vector<8x32xf32>, vector<32x64xf32>, vector<8x64xf32> -> vector<8x64xf32>
    %c0_3 = arith.constant 0 : index
    %c0_4 = arith.constant 0 : index
    %3 = vector.load %arg4[%c0_3, %c0_4] : memref<1x64xf32, #tpu.memory_space<vmem>>, vector<1x64xf32>
    %4 = vector.broadcast %3 : vector<1x64xf32> to vector<8x64xf32>
    %5 = arith.addf %2, %4 : vector<8x64xf32>
    %6 = math.tanh %5 : vector<8x64xf32>
    %c0_5 = arith.constant 0 : index
    %c0_6 = arith.constant 0 : index
    %7 = vector.load %arg5[%c0_5, %c0_6] : memref<64x128xf32, #tpu.memory_space<vmem>>, vector<64x128xf32>
    %cst_7 = arith.constant dense<0.000000e+00> : vector<8x128xf32>
    %8 = tpu.matmul %6, %7, %cst_7 {dimension_numbers = #tpu.dot_dimension_numbers<[1], [0], [0], [1], [0, 0, 1, 1], [], []>} : vector<8x64xf32>, vector<64x128xf32>, vector<8x128xf32> -> vector<8x128xf32>
    %c0_8 = arith.constant 0 : index
    %c0_9 = arith.constant 0 : index
    %9 = vector.load %arg6[%c0_8, %c0_9] : memref<1x128xf32, #tpu.memory_space<vmem>>, vector<1x128xf32>
    %10 = vector.broadcast %9 : vector<1x128xf32> to vector<8x128xf32>
    %11 = arith.addf %8, %10 : vector<8x128xf32>
    %c0_10 = arith.constant 0 : index
    %c0_11 = arith.constant 0 : index
    %12 = vector.load %arg7[%c0_10, %c0_11] : memref<8x128xf32, #tpu.memory_space<vmem>>, vector<8x128xf32>
    tpu.vector_store %arg7[%c0_10, %c0_11], %11 {strides = array<i32>} : memref<8x128xf32, #tpu.memory_space<vmem>>, vector<8x128xf32>,
    return
  }
  func.func @transform_0(%arg0: i32, %arg1: i32) -> (i32, i32) {
    %c0_i32 = arith.constant 0 : i32
    %c0_i32_0 = arith.constant 0 : i32
    return %arg1, %c0_i32 : i32, i32
  }
  func.func @transform_1(%arg0: i32, %arg1: i32) -> (i32, i32) {
    %c0_i32 = arith.constant 0 : i32
    %c0_i32_0 = arith.constant 0 : i32
    %c0_i32_1 = arith.constant 0 : i32
    return %c0_i32, %c0_i32_0 : i32, i32
  }
  func.func @transform_2(%arg0: i32, %arg1: i32) -> (i32, i32) {
    %c0_i32 = arith.constant 0 : i32
    %c0_i32_0 = arith.constant 0 : i32
    %c0_i32_1 = arith.constant 0 : i32
    return %c0_i32, %c0_i32_0 : i32, i32
  }
  func.func @transform_3(%arg0: i32, %arg1: i32) -> (i32, i32) {
    %c0_i32 = arith.constant 0 : i32
    %c0_i32_0 = arith.constant 0 : i32
    return %c0_i32, %arg0 : i32, i32
  }
  func.func @transform_4(%arg0: i32, %arg1: i32) -> (i32, i32) {
    %c0_i32 = arith.constant 0 : i32
    %c0_i32_0 = arith.constant 0 : i32
    return %c0_i32, %arg0 : i32, i32
  }
  func.func @transform_5(%arg0: i32, %arg1: i32) -> (i32, i32) {
    %c0_i32 = arith.constant 0 : i32
    return %arg1, %arg0 : i32, i32
  }
}

</mosaic_0001>

<bundles_post_ra>
// kernel: tpu_custom_call.1
= control target key start
LH: loop header
LB: loop body
LE: loop exit
PB: predicated region body
PF: predicated region fallthrough
CT: control target
= control target key end

     0   :  { %10 = vsyncpa [#allocation3], 0  ;;  %s453_s0 = inlined_call_operand.hbm [shape: f32[8,32], index: 0, kind: input, shape index: {}]   ;;  %s454_s1 = inlined_call_operand.hbm [shape: f32[32,64], index: 1, kind: input, shape index: {}]   ;;  %s455_s2 = inlined_call_operand.vmem [shape: f32[1,64], index: 2, kind: input, shape index: {}]   ;;  %s456_s3 = inlined_call_operand.hbm [shape: f32[64,128], index: 3, kind: input, shape index: {}]   ;;  %s457_s4 = inlined_call_operand.vmem [shape: f32[1,128], index: 4, kind: input, shape index: {}]   ;;  %s458_s5 = inlined_call_operand.hbm [shape: f32[8,128], index: 5, kind: output, shape index: {}]  }
   0x1   :  { %11 = vsyncpa [#allocation6], 0 }
   0x2   :  { %12 = vsyncpa [#allocation4], 0  ;;  %s397_s18 = smov [#allocation5]  }
   0x3   :  { %s28_s19 = sshll.u32 %s397_s18, 4  ;;  %s29_s19 = int_to_ptr.vmem [resolvable:$true] %s28_s19 }
   0x4   :  { %s319_s20 = scalar_lea.vmem %s29_s19, 512  ;;  %p324_p1 = scmp.lt.s32.totalorder %s29_s19, %s29_s19 }
   0x5   :  { %p320_p0 = scmp.ne.s32.totalorder %s29_s19, %s319_s20  ;;  %p325_p2 = scmp.lt.s32.totalorder %s319_s20, %s319_s20 }
   0x7   :  { %p326_p3 = por %p325_p2, %p324_p1 }
   0x9   :  { %p327_p4 = pnand %p326_p3, %p320_p0 }
   0xb   :  { %330 = shalt.err (!%p327_p4)
}
   0xc   :  { %s398_s21 = smov 128   ;;  %s399_s22 = smov 8  }
   0xd   :  { %34 = dma.hbm_to_vmem [thread:$0]  %s454_s1, 512, %s29_s19, [#allocation6], %s398_s21, %s398_s21, %s399_s22  }
   0xe   :  { %s400_s25 = smov [#allocation2]   ;;  %s401_s27 = smov [#allocation7]  }
   0xf   :  { %s19_s26 = sshll.u32 %s400_s25, 4  ;;  %s42_s28 = sshll.u32 %s401_s27, 4  ;;  %s20_s26 = int_to_ptr.vmem [resolvable:$true] %s19_s26  ;;  %s43_s28 = int_to_ptr.vmem [resolvable:$true] %s42_s28 }
  0x10   :  { %s339_s29 = scalar_lea.vmem %s20_s26, 128  ;;  %p344_p6 = scmp.lt.s32.totalorder %s20_s26, %s20_s26 }
  0x11   :  { %p340_p5 = scmp.ne.s32.totalorder %s20_s26, %s339_s29  ;;  %p345_p7 = scmp.lt.s32.totalorder %s339_s29, %s339_s29 }
  0x13   :  { %p346_p8 = por %p345_p7, %p344_p6 }
  0x15   :  { %p347_p9 = pnand %p346_p8, %p340_p5 }
  0x17   :  { %350 = shalt.err (!%p347_p9)
}
  0x18   :  { %22 = dma.hbm_to_vmem [thread:$0]  %s453_s0, 128, %s20_s26, [#allocation3]  }
  0x19   :  { %s359_s7 = scalar_lea.vmem %s43_s28, 1024  ;;  %p364_p11 = scmp.lt.s32.totalorder %s43_s28, %s43_s28 }
  0x1a   :  { %p360_p10 = scmp.ne.s32.totalorder %s43_s28, %s359_s7  ;;  %p365_p12 = scmp.lt.s32.totalorder %s359_s7, %s359_s7 }
  0x1c   :  { %p366_p13 = por %p365_p12, %p364_p11 }
  0x1e   :  { %p367_p0 = pnand %p366_p13, %p360_p10 }
  0x20   :  { %370 = shalt.err (!%p367_p0)
}
  0x21   :  { %48 = dma.hbm_to_vmem [thread:$0]  %s456_s3, 1024, %s43_s28, [#allocation6], %s398_s21, %s398_s21, %s399_s22  }
  0x22   :  { %391 = dma.done.wait [#allocation3], 128  }
  0x23   :  { %392 = vsyncadd [#allocation3], 4294967168 }
  0x24   :  { %393 = dma.done.wait [#allocation6], 1536  }
  0x25   :  { %394 = vsyncadd [#allocation6], 4294965760  ;;  %v402_v0 = vmov 0.0   ;;  %vm403_vm0 = vmmov 0   ;;  %v64_v1 = vld [vmem:[#allocation5 + $0x18] sm:$0xff]  ;;  %v63_v2 = vld [vmem:[#allocation5 + $0x10] sm:$0xff] }
  0x26   :  { %271 = vmatprep.subr.mxu0 %v402_v0  ;;  %279 = vmatprep.mubr.msk.f32.mxu0 %vm403_vm0, %v402_v0  ;;  %v62_v3 = vld [vmem:[#allocation5 + $0x8] sm:$0xff]  ;;  %v61_v4 = vld [vmem:[#allocation5] sm:$0xff]  ;;  %v60_v5 = vld [vmem:[#allocation2] sm:$0xff]  ;;  %vm72_vm1 = vcmask 261120   ;;  %vm162_vm2 = vcmask 523264   ;;  %s404_s11 = smov [#allocation8]  }
  0x27   :  { %282 = vmatprep.subr.mxu1 %v402_v0  ;;  %298 = vmatprep.mubr.msk.f32.mxu1 %vm403_vm0, %v402_v0  ;;  %v154_v6 = vld [vmem:[#allocation7 + $0x38] sm:$0xff]  ;;  %v153_v7 = vld [vmem:[#allocation7 + $0x30] sm:$0xff]  ;;  %v152_v8 = vld [vmem:[#allocation7 + $0x28] sm:$0xff]  ;;  %s243_s12 = sshll.u32 %s404_s11, 4  ;;  %s244_s12 = int_to_ptr.vmem [resolvable:$true] %s243_s12 }
  0x28   :  { %272 = vmatpush3.msra.mxu0 %v64_v1  ;;  %283 = vmatpush3.msra.mxu1 %v154_v6  ;;  %v151_v9 = vld [vmem:[#allocation7 + $0x20] sm:$0xff]  ;;  %v150_v10 = vld [vmem:[#allocation7 + $0x18] sm:$0xff]  ;;  %v149_v11 = vld [vmem:[#allocation7 + $0x10] sm:$0xff]  ;;  %s371_s13 = scalar_lea.vmem %s244_s12, 128  ;;  %p376_p2 = scmp.lt.s32.totalorder %s244_s12, %s244_s12 }
  0x29   :  { %273 = vmatprep.subr.mxu0 %v402_v0  ;;  %284 = vmatprep.subr.mxu1 %v402_v0  ;;  %v148_v12 = vld [vmem:[#allocation7 + $0x8] sm:$0xff]  ;;  %v147_v13 = vld [vmem:[#allocation7] sm:$0xff]  ;;  %v253_v14 = vld [vmem:[%s455_s2] ss:$0 sm:$0xff]  ;;  %p372_p1 = scmp.ne.s32.totalorder %s244_s12, %s371_s13  ;;  %p377_p3 = scmp.lt.s32.totalorder %s371_s13, %s371_s13 }
  0x2a   :  { %274 = vmatpush3.msra.mxu0 %v63_v2  ;;  %285 = vmatpush3.msra.mxu1 %v153_v7  ;;  %v255_v19 = vld [vmem:[%s457_s4] ss:$0 sm:$0xff] }
  0x2b   :  { %275 = vmatprep.subr.mxu0 %v402_v0  ;;  %286 = vmatprep.subr.mxu1 %v402_v0  ;;  %p378_p4 = por %p377_p3, %p376_p2 }
  0x2c   :  { %276 = vmatpush3.msra.mxu0 %v62_v3  ;;  %287 = vmatpush3.msra.mxu1 %v152_v8 }
  0x2d   :  { %277 = vmatprep.subr.mxu0 %v402_v0  ;;  %288 = vmatprep.subr.mxu1 %v402_v0  ;;  %p379_p5 = pnand %p378_p4, %p372_p1 }
  0x2e   :  { %278 = vmatpush3.msra.mxu0 %v61_v4  ;;  %289 = vmatpush3.msra.mxu1 %v151_v9 }
  0x2f   :  { %280 = vmatmul.mubr.msk.f32.vlgmr.msra.gmra.mxu0 %vm72_vm1, %v60_v5  ;;  %290 = vmatprep.subr.mxu1 %v402_v0 }
  0x30   :  { %291 = vmatpush3.msra.mxu1 %v150_v10 }
  0x31   :  { %292 = vmatprep.subr.mxu1 %v402_v0 }
  0x32   :  { %293 = vmatpush3.msra.mxu1 %v149_v11 }
  0x33   :  { %294 = vmatprep.subr.mxu1 %v402_v0 }
  0x34   :  { %295 = vmatpush3.msra.mxu1 %v148_v12 }
  0x35   :  { %296 = vmatprep.subr.mxu1 %v402_v0 }
  0x36   :  { %297 = vmatpush3.msra.mxu1 %v147_v13 }
  0xef   :  { %v142_v15 = vpop.f32.mrf.mxu0 }
  0xf0   :  { %v143_v16 = vadd.f32 %v253_v14, %v142_v15 }
  0xf1   :  { %v281_v17 = vpop.f32.mrf.mxu0 }
  0xf2   :  { %309 = vtanh.f32 %v143_v16 }
  0xff   :  { %v310_v18 = vpop.eup %309 }
 0x100   :  { %299 = vmatmul.mubr.msk.f32.vlgmr.msra.gmra.mxu1 %vm162_vm2, %v310_v18 }
 0x1c0   :  { %v232_v20 = vpop.f32.mrf.mxu1 }
 0x1c1   :  { %v233_v21 = vadd.f32 %v255_v19, %v232_v20 }
 0x1c2   :  { %v300_v22 = vpop.f32.mrf.mxu1 }
 0x1c3   :  { %236 = vst [vmem:[#allocation8] sm:$0xff] %v233_v21 }
 0x1c4   :  { %382 = shalt.err (!%p379_p5)
}
 0x1c5   :  { %246 = dma.vmem_to_hbm [thread:$0]  %s244_s12, 128, %s458_s5, [#allocation4]  }
 0x1c6   :  { %395 = dma.done.wait [#allocation4], 128  }
 0x1c7   :  { %396 = vsyncadd [#allocation4], 4294967168 }
 0x1c8   :  { %250 = vsyncpa [#allocation3], 1 }
 0x1c9   :  { %251 = vsyncpa [#allocation6], 1 }
 0x1ca   :  { %252 = vsyncpa [#allocation4], 1 }

</bundles_post_ra>
